<compile_context>
chip_gen: v7x
topology: tpu7x:2x2x1
jax: 0.10.0
libtpu: 0.0.40
codegen_flags: <defaults>
</compile_context>

<pallas_src>
import jax
import jax.numpy as jnp
from jax.experimental import pallas as pl
from jax.experimental.pallas import tpu as pltpu


def _pose3d_shrink_kernel(x_ref, w1_ref, shift_ref, w2_ref, b2_ref, o_ref):
    # x_ref:     (Cin, TM)       channels-first tile, lane axis = spatial (T*Nv)
    # w1_ref:    (channels, Cin) conv_1 weight with BN(eval) scale pre-folded
    # shift_ref: (channels, 1)   BN shift = beta - mean*scale
    # w2_ref:    (JD, channels)  shrink weight
    # b2_ref:    (JD, 1)         shrink bias
    # o_ref:     (JD, TM)        lane-dense output tile
    x = x_ref[...]
    # conv_1 (1x1, bias=False) with folded BN scale  ->  (channels, TM), f32 acc
    h = jnp.dot(w1_ref[...], x, preferred_element_type=jnp.float32)
    # BN shift + ReLU  (dropout is identity in eval mode)
    h = jnp.maximum(h + shift_ref[...], 0.0)
    # shrink (1x1 conv with bias)  ->  (JD, TM)
    h = h.astype(w2_ref.dtype)
    o_ref[...] = (
        jnp.dot(w2_ref[...], h, preferred_element_type=jnp.float32) + b2_ref[...]
    )


def pose3d_shrink_forward(x, params, num_joints=17, dim_joint=3,
                          tile_m=2048, input_dtype=None):
    """Pose3dShrink.forward (eval mode, num_layers == 0).

    x: (B, C1, C2, T, Nv) float  ->  (B, T, num_joints, dim_joint, Nv) float32

    params:
      conv1_w   (channels, Cin)   PyTorch (out, in, 1, 1) squeezed
      bn1_gamma, bn1_beta, bn1_mean, bn1_var  (channels,)
      shrink_w  (J*D, channels)
      shrink_b  (J*D,)

    input_dtype: optionally cast x / weights (e.g. jnp.bfloat16) before the
    pallas_call for HBM-bandwidth savings; accumulation stays f32.
    """
    assert tile_m % 128 == 0
    B, C1, C2, T, Nv = x.shape
    Cin = C1 * C2
    eps = 1e-5

    w1 = params["conv1_w"]          # (channels, Cin)
    gamma = params["bn1_gamma"]
    beta = params["bn1_beta"]
    mean = params["bn1_mean"]
    var = params["bn1_var"]
    w2 = params["shrink_w"]         # (JD, channels)
    b2 = params["shrink_b"]         # (JD,)

    channels = w1.shape[0]
    jd = w2.shape[0]
    assert jd == num_joints * dim_joint

    # Fold BatchNorm (eval) into the conv_1 weight (scale) and a shift vector.
    scale = gamma * jax.lax.rsqrt(var + eps)              # (channels,)
    shift = (beta - mean * scale).reshape(channels, 1)    # (channels, 1)
    w1s = w1 * scale[:, None]                             # (channels, Cin)

    # (B, C1, C2, T, Nv) -> (B, Cin, M) is a pure view (no HBM pass).
    M = T * Nv
    x3 = x.reshape(B, Cin, M)

    if input_dtype is not None:
        x3 = x3.astype(input_dtype)
        w1s = w1s.astype(input_dtype)
        w2 = w2.astype(input_dtype)

    # Tile choice (no padding / slicing HBM passes):
    #  * M fits in one tile -> block spans the full spatial extent (allowed
    #    since it equals the full array dim), one grid step per batch.
    #  * otherwise -> 128-aligned tile, trailing partial block handled by
    #    Pallas (masked stores); per-column math is independent so garbage in
    #    the padded lanes never contaminates valid outputs.
    if M <= tile_m:
        tm = M
    else:
        tm = tile_m
    grid = (B, pl.cdiv(M, tm))

    in_bytes = 4 if input_dtype is None else jnp.dtype(input_dtype).itemsize
    cost = pl.CostEstimate(
        flops=2 * B * M * (Cin * channels + channels * jd),
        transcendentals=0,
        bytes_accessed=B * M * (Cin * in_bytes + jd * 4)
        + in_bytes * (channels * Cin + jd * channels) + 4 * (channels + jd),
    )

    out = pl.pallas_call(
        _pose3d_shrink_kernel,
        out_shape=jax.ShapeDtypeStruct((B, jd, M), jnp.float32),
        grid_spec=pltpu.PrefetchScalarGridSpec(
            num_scalar_prefetch=0,
            grid=grid,
            in_specs=[
                # x tile: batch squeezed, full Cin, TM spatial columns.
                pl.BlockSpec((None, Cin, tm), lambda b, m: (b, 0, m)),
                # Weights / shift / bias stay VMEM-resident across the grid.
                pl.BlockSpec((channels, Cin), lambda b, m: (0, 0)),
                pl.BlockSpec((channels, 1), lambda b, m: (0, 0)),
                pl.BlockSpec((jd, channels), lambda b, m: (0, 0)),
                pl.BlockSpec((jd, 1), lambda b, m: (0, 0)),
            ],
            out_specs=pl.BlockSpec((None, jd, tm), lambda b, m: (b, 0, m)),
        ),
        compiler_params=pltpu.CompilerParams(
            dimension_semantics=("parallel", "parallel"),
            vmem_limit_bytes=64 * 1024 * 1024,
        ),
        cost_estimate=cost,
    )(x3, w1s, shift, w2, b2.reshape(jd, 1))

    # (B, JD, T*Nv) -> (B, J, D, T, Nv) -> (B, T, J, D, Nv)  (as in PyTorch)
    out = out.reshape(B, num_joints, dim_joint, T, Nv)
    out = jnp.transpose(out, (0, 3, 1, 2, 4))
    return out


def _reference_forward(x, params, num_joints=17, dim_joint=3):
    """Pure-JAX reference mirroring the PyTorch forward (eval mode)."""
    B, C1, C2, T, Nv = x.shape
    Cin = C1 * C2
    eps = 1e-5
    x4 = x.reshape(B, Cin, T, Nv)                                  # NCHW view
    # conv_1 (1x1, no bias)
    h = jnp.einsum("bchw,oc->bohw", x4, params["conv1_w"])
    # bn_1 (eval) + ReLU  (dropout = identity)
    scale = params["bn1_gamma"] / jnp.sqrt(params["bn1_var"] + eps)
    shift = params["bn1_beta"] - params["bn1_mean"] * scale
    h = jnp.maximum(h * scale[None, :, None, None] + shift[None, :, None, None], 0.0)
    # shrink (1x1 conv + bias)
    y = (jnp.einsum("bchw,oc->bohw", h, params["shrink_w"])
         + params["shrink_b"][None, :, None, None])
    # view + permute, as in PyTorch
    y = y.reshape(B, num_joints, dim_joint, T, Nv)
    y = jnp.transpose(y, (0, 3, 1, 2, 4))
    return y


if __name__ == "__main__":
    # Small, module-consistent shapes:
    #   N_views = 4, cfg.NETWORK.TRANSFORM_DIM = 16  =>  conv_1 in_channels = 64
    #   channels = 32, T = 8, num_joints = 17, dim_joint = 3
    B, Nv, TDIM, T = 2, 4, 16, 8
    channels = 32
    num_joints, dim_joint = 17, 3
    Cin = Nv * TDIM

    key = jax.random.PRNGKey(0)
    k = jax.random.split(key, 8)

    x = jax.random.normal(k[0], (B, Nv, TDIM, T, Nv), dtype=jnp.float32)

    params = {
        "conv1_w": 0.1 * jax.random.normal(k[1], (channels, Cin), dtype=jnp.float32),
        "bn1_gamma": 1.0 + 0.1 * jax.random.normal(k[2], (channels,), dtype=jnp.float32),
        "bn1_beta": 0.1 * jax.random.normal(k[3], (channels,), dtype=jnp.float32),
        "bn1_mean": 0.1 * jax.random.normal(k[4], (channels,), dtype=jnp.float32),
        "bn1_var": jax.random.uniform(k[5], (channels,), dtype=jnp.float32,
                                      minval=0.5, maxval=1.5),
        "shrink_w": 0.1 * jax.random.normal(k[6], (num_joints * dim_joint, channels),
                                            dtype=jnp.float32),
        "shrink_b": 0.1 * jax.random.normal(k[7], (num_joints * dim_joint,),
                                            dtype=jnp.float32),
    }

    out = pose3d_shrink_forward(x, params, num_joints=num_joints, dim_joint=dim_joint)
    out = jax.block_until_ready(out)

    ref = _reference_forward(x, params, num_joints=num_joints, dim_joint=dim_joint)
    ref = jax.block_until_ready(ref)

    assert out.shape == (B, T, num_joints, dim_joint, Nv), out.shape
    assert jnp.allclose(out, ref, rtol=1e-4, atol=1e-4), float(jnp.max(jnp.abs(out - ref)))

    print("KERNEL_OK")
</pallas_src>

<mosaic_0001>
module attributes {stable_mosaic.version = 11 : i64} {
  func.func @_pose3d_shrink_kernel(%arg0: i32, %arg1: i32, %arg2: memref<1x64x32xf32, #tpu.memory_space<vmem>>, %arg3: memref<32x64xf32, #tpu.memory_space<vmem>>, %arg4: memref<32x1xf32, #tpu.memory_space<vmem>>, %arg5: memref<51x32xf32, #tpu.memory_space<vmem>>, %arg6: memref<51x1xf32, #tpu.memory_space<vmem>>, %arg7: memref<1x51x32xf32, #tpu.memory_space<vmem>>) attributes {dimension_semantics = [#tpu.dimension_semantics<parallel>, #tpu.dimension_semantics<parallel>], iteration_bounds = array<i64: 2, 1>, scalar_prefetch = 0 : i64, scratch_operands = 0 : i64, tpu.core_type = #tpu.core_type<tc>, window_params = [{transform_indices = @transform_0, window_bounds = array<i64: 1, 64, 32>}, {pipeline_mode = #tpu.pipeline_mode<synchronous>, transform_indices = @transform_1, window_bounds = array<i64: 32, 64>}, {pipeline_mode = #tpu.pipeline_mode<synchronous>, transform_indices = @transform_2, window_bounds = array<i64: 32, 1>}, {pipeline_mode = #tpu.pipeline_mode<synchronous>, transform_indices = @transform_3, window_bounds = array<i64: 51, 32>}, {pipeline_mode = #tpu.pipeline_mode<synchronous>, transform_indices = @transform_4, window_bounds = array<i64: 51, 1>}, {transform_indices = @transform_5, window_bounds = array<i64: 1, 51, 32>}]} {
    %c0 = arith.constant 0 : index
    %c0_0 = arith.constant 0 : index
    %c0_1 = arith.constant 0 : index
    %0 = vector.load %arg2[%c0, %c0_0, %c0_1] : memref<1x64x32xf32, #tpu.memory_space<vmem>>, vector<1x64x32xf32>
    %1 = vector.shape_cast %0 : vector<1x64x32xf32> to vector<64x32xf32>
    %c0_2 = arith.constant 0 : index
    %c0_3 = arith.constant 0 : index
    %2 = vector.load %arg3[%c0_2, %c0_3] : memref<32x64xf32, #tpu.memory_space<vmem>>, vector<32x64xf32>
    %cst = arith.constant dense<0.000000e+00> : vector<32x32xf32>
    %3 = tpu.matmul %2, %1, %cst {dimension_numbers = #tpu.dot_dimension_numbers<[1], [0], [0], [1], [0, 0, 1, 1], [], []>} : vector<32x64xf32>, vector<64x32xf32>, vector<32x32xf32> -> vector<32x32xf32>
    %c0_4 = arith.constant 0 : index
    %c0_5 = arith.constant 0 : index
    %4 = vector.load %arg4[%c0_4, %c0_5] : memref<32x1xf32, #tpu.memory_space<vmem>>, vector<32x1xf32>
    %5 = vector.broadcast %4 : vector<32x1xf32> to vector<32x32xf32>
    %6 = arith.addf %3, %5 : vector<32x32xf32>
    %cst_6 = arith.constant 0.000000e+00 : f32
    %7 = vector.broadcast %cst_6 : f32 to vector<32x32xf32>
    %8 = arith.maximumf %6, %7 : vector<32x32xf32>
    %c0_7 = arith.constant 0 : index
    %c0_8 = arith.constant 0 : index
    %9 = vector.load %arg5[%c0_7, %c0_8] : memref<51x32xf32, #tpu.memory_space<vmem>>, vector<51x32xf32>
    %cst_9 = arith.constant dense<0.000000e+00> : vector<51x32xf32>
    %10 = tpu.matmul %9, %8, %cst_9 {dimension_numbers = #tpu.dot_dimension_numbers<[1], [0], [0], [1], [0, 0, 1, 1], [], []>} : vector<51x32xf32>, vector<32x32xf32>, vector<51x32xf32> -> vector<51x32xf32>
    %c0_10 = arith.constant 0 : index
    %c0_11 = arith.constant 0 : index
    %11 = vector.load %arg6[%c0_10, %c0_11] : memref<51x1xf32, #tpu.memory_space<vmem>>, vector<51x1xf32>
    %12 = vector.broadcast %11 : vector<51x1xf32> to vector<51x32xf32>
    %13 = arith.addf %10, %12 : vector<51x32xf32>
    %c0_12 = arith.constant 0 : index
    %c0_13 = arith.constant 0 : index
    %c0_14 = arith.constant 0 : index
    %14 = vector.load %arg7[%c0_12, %c0_13, %c0_14] : memref<1x51x32xf32, #tpu.memory_space<vmem>>, vector<1x51x32xf32>
    %15 = vector.shape_cast %14 : vector<1x51x32xf32> to vector<51x32xf32>
    %16 = vector.shape_cast %13 : vector<51x32xf32> to vector<1x51x32xf32>
    tpu.vector_store %arg7[%c0_12, %c0_13, %c0_14], %16 {strides = array<i32>} : memref<1x51x32xf32, #tpu.memory_space<vmem>>, vector<1x51x32xf32>,
    return
  }
  func.func @transform_0(%arg0: i32, %arg1: i32) -> (i32, i32, i32) {
    %c0_i32 = arith.constant 0 : i32
    %c0_i32_0 = arith.constant 0 : i32
    return %arg0, %c0_i32, %arg1 : i32, i32, i32
  }
  func.func @transform_1(%arg0: i32, %arg1: i32) -> (i32, i32) {
    %c0_i32 = arith.constant 0 : i32
    %c0_i32_0 = arith.constant 0 : i32
    %c0_i32_1 = arith.constant 0 : i32
    return %c0_i32, %c0_i32_0 : i32, i32
  }
  func.func @transform_2(%arg0: i32, %arg1: i32) -> (i32, i32) {
    %c0_i32 = arith.constant 0 : i32
    %c0_i32_0 = arith.constant 0 : i32
    %c0_i32_1 = arith.constant 0 : i32
    return %c0_i32, %c0_i32_0 : i32, i32
  }
  func.func @transform_3(%arg0: i32, %arg1: i32) -> (i32, i32) {
    %c0_i32 = arith.constant 0 : i32
    %c0_i32_0 = arith.constant 0 : i32
    %c0_i32_1 = arith.constant 0 : i32
    return %c0_i32, %c0_i32_0 : i32, i32
  }
  func.func @transform_4(%arg0: i32, %arg1: i32) -> (i32, i32) {
    %c0_i32 = arith.constant 0 : i32
    %c0_i32_0 = arith.constant 0 : i32
    %c0_i32_1 = arith.constant 0 : i32
    return %c0_i32, %c0_i32_0 : i32, i32
  }
  func.func @transform_5(%arg0: i32, %arg1: i32) -> (i32, i32, i32) {
    %c0_i32 = arith.constant 0 : i32
    %c0_i32_0 = arith.constant 0 : i32
    return %arg0, %c0_i32, %arg1 : i32, i32, i32
  }
}

</mosaic_0001>

<bundles_post_ra>
// kernel: tpu_custom_call.1
= control target key start
LH: loop header
LB: loop body
LE: loop exit
PB: predicated region body
PF: predicated region fallthrough
CT: control target
= control target key end

     0   :  { %10 = vsyncpa [#allocation3], 0  ;;  %s1646_s0 = inlined_call_operand.hbm [shape: f32[2,64,32], index: 0, kind: input, shape index: {}]   ;;  %s1647_s1 = inlined_call_operand.hbm [shape: f32[32,64], index: 1, kind: input, shape index: {}]   ;;  %s1648_s2 = inlined_call_operand.hbm [shape: f32[32,1], index: 2, kind: input, shape index: {}]   ;;  %s1649_s3 = inlined_call_operand.hbm [shape: f32[51,32], index: 3, kind: input, shape index: {}]   ;;  %s1650_s4 = inlined_call_operand.hbm [shape: f32[51,1], index: 4, kind: input, shape index: {}]   ;;  %s1651_s5 = inlined_call_operand.hbm [shape: f32[2,51,32], index: 5, kind: output, shape index: {}]  }
   0x1   :  { %12 = vsyncpa [#allocation3 + $0x1], 0 }
   0x2   :  { %13 = vsyncpa [#allocation6], 0 }
   0x3   :  { %14 = vsyncpa [#allocation9], 0 }
   0x4   :  { %15 = vsyncpa [#allocation4], 0 }
   0x5   :  { %17 = vsyncpa [#allocation4 + $0x1], 0  ;;  %s1298_s18 = smov 0   ;;  %s1300_s19 = smov 0  }
   0x6   :  { %s1302_s20 = smov 0   ;;  %s1304_s21 = smov 0  }
   0x7   :  { %s1306_s22 = smov 0   ;;  %s1308_s23 = smov 0  }
   0x8 LB: > { %1658 = sst [smem:[#allocation16_spill]] %s1232_s18  ;;  %s773_s24 = sadd.s32 4294967295, %s1252_s23   ;;  %s1252_s23 = sphi %s1308_s23, %s23_s23   ;;  %s1248_s22 = sphi %s1306_s22, %s1681_s22   ;;  %s1244_s21 = sphi %s1304_s21, %s1680_s21   ;;  %s1240_s20 = sphi %s1302_s20, %s1679_s20   ;;  %s1236_s19 = sphi %s1300_s19, %s1678_s19   ;;  %s1232_s18 = sphi %s1298_s18, %s1677_s18  }
   0x9   : > { %s774_s25 = sadd.s32 4294967294, %s1252_s23   ;;  %p57_p0 = scmp.ne.s32.totalorder %s1236_s19, %s1232_s18 }
   0xa   : > { %p1332_p1 = scmp.eq.s32.totalorder %s773_s24, 0  ;;  %p1336_p2 = scmp.eq.s32.totalorder %s773_s24, 1 }
   0xb   : > { %p173_p3 = scmp.eq.s32.totalorder %s774_s25, 1  ;;  %p775_p5 = scmp.ge.s32.totalorder %s1252_s23, 1 }
   0xc   : > { %s1659_s26 = scalar_select %p1332_p1, 1, 0 }
   0xd   : > { %s1660_s27 = scalar_select %p1336_p2, 1, 0 }
   0xe   : > { %p1342_p4 = por %p1332_p1, %p57_p0  ;;  %p1347_p6 = por %p173_p3, %p57_p0 }
   0xf   : > { %p180_p7 = scmp.lt.s32.totalorder %s1252_s23, 3  ;;  %s1254_s6 = smov [#allocation5]  }
  0x10   : > { %s1661_s28 = scalar_select %p1342_p4, 1, 0 }
  0x11   : > { %s1662_s29 = scalar_select %p1347_p6, 1, 0 }
  0x12   : > { %p1352_p8 = pnand %p775_p5, %p180_p7  ;;  %s192_s7 = sshll.u32 %s1254_s6, 4  ;;  %s1356_s7 = int_to_ptr.vmem [resolvable:$true] %s192_s7 }
  0x13   : > { %1663 = sst [smem:[#allocation17_spill]] %s1662_s29  ;;  %s1255_s9 = smov [#allocation8]  }
  0x14   : > { %s1664_s30 = scalar_select %p1352_p8, 1, 0 }
  0x15   : > { %p927_p9 = pneg %p1352_p8  ;;  %s218_s10 = sshll.u32 %s1255_s9, 4  ;;  %s1367_s10 = int_to_ptr.vmem [resolvable:$true] %s218_s10 }
  0x16   : > { %s1256_s11 = smov [#allocation7]   ;;  %s1020_s15 = scalar_lea.hbm %s1647_s1, 512 }
  0x17   : > { %p1363_p11 = pnand %p927_p9, %p1332_p1  ;;  %s1369_s12 = sshll.u32 %s1256_s11, 4  ;;  %s206_s12 = int_to_ptr.vmem [resolvable:$true] %s1369_s12 }
  0x18   : > { %p1021_p12 = scmp.ne.s32.totalorder %s1647_s1, %s1020_s15  ;;  %p1027_p5 = scmp.lt.u32.totalorder %s1020_s15, %s1647_s1 }
  0x19   : > { %p1379_p13 = pneg %p1363_p11 }
  0x1b   : > { %p1023_p0 = pnand %p1379_p13, %p1021_p12 }
  0x1d   : > { %p1024_p3 = pneg %p1023_p0 }
  0x1f   : > { %p1029_p7 = pnand %p1027_p5, %p1024_p3 }
  0x21   : > { %1032 = shalt.err (!%p1029_p7)
}
  0x22   : > { %s1033_s9 = scalar_lea.vmem %s1356_s7, 512  ;;  %p1041_p1 = scmp.lt.s32.totalorder %s1356_s7, %s1356_s7 }
  0x23   : > { %p1034_p9 = scmp.ne.s32.totalorder %s1356_s7, %s1033_s9  ;;  %p1042_p4 = scmp.lt.s32.totalorder %s1033_s9, %s1033_s9 }
  0x25   : > { %p1036_p10 = pnand %p1034_p9, %p1379_p13  ;;  %p1043_p12 = por %p1042_p4, %p1041_p1 }
  0x27   : > { %p1037_p6 = pneg %p1036_p10 }
  0x29   : > { %p1044_p0 = pnand %p1043_p12, %p1037_p6 }
  0x2b   : > { %1047 = shalt.err (!%p1044_p0)
}
  0x2c   : > { %s1257_s11 = smov 128   ;;  %s1258_s13 = smov 8  }
  0x2d   : > { %930 = dma.hbm_to_vmem [thread:$0]  (!%p1363_p11), %s1647_s1, 512, %s1356_s7, [#allocation6], %s1257_s11, %s1257_s11, %s1258_s13  }
  0x2e   : > { %s1048_s25 = scalar_lea.hbm %s1649_s3, 896 }
  0x2f   : > { %p1049_p1 = scmp.ne.s32.totalorder %s1649_s3, %s1048_s25  ;;  %p1055_p10 = scmp.lt.u32.totalorder %s1048_s25, %s1649_s3 }
  0x31   : > { %p1051_p4 = pnand %p1049_p1, %p1379_p13 }
  0x33   : > { %p1052_p6 = pneg %p1051_p4 }
  0x35   : > { %p1057_p3 = pnand %p1055_p10, %p1052_p6 }
  0x37   : > { %1060 = shalt.err (!%p1057_p3)
}
  0x38   : > { %s1061_s7 = scalar_lea.vmem %s1367_s10, 896  ;;  %p1069_p12 = scmp.lt.s32.totalorder %s1367_s10, %s1367_s10 }
  0x39   : > { %p1062_p5 = scmp.ne.s32.totalorder %s1367_s10, %s1061_s7  ;;  %p1070_p0 = scmp.lt.s32.totalorder %s1061_s7, %s1061_s7 }
  0x3b   : > { %p1064_p7 = pnand %p1062_p5, %p1379_p13  ;;  %p1071_p1 = por %p1070_p0, %p1069_p12 }
  0x3d   : > { %p1065_p9 = pneg %p1064_p7 }
  0x3f   : > { %p1072_p4 = pnand %p1071_p1, %p1065_p9 }
  0x41   : > { %1075 = shalt.err (!%p1072_p4)
}
  0x42   : > { %936 = dma.hbm_to_vmem [thread:$0]  (!%p1363_p11), %s1649_s3, 896, %s1367_s10, [#allocation9], %s1257_s11, %s1257_s11, %s1258_s13  }
  0x43   : > { %s1076_s16 = scalar_lea.hbm %s1648_s2, 512 }
  0x44   : > { %p1077_p6 = scmp.ne.s32.totalorder %s1648_s2, %s1076_s16  ;;  %p1083_p5 = scmp.lt.u32.totalorder %s1076_s16, %s1648_s2 }
  0x46   : > { %p1079_p10 = pnand %p1077_p6, %p1379_p13 }
  0x48   : > { %p1080_p3 = pneg %p1079_p10 }
  0x4a   : > { %p1085_p7 = pnand %p1083_p5, %p1080_p3 }
  0x4c   : > { %1088 = shalt.err (!%p1085_p7)
}
  0x4d   : > { %s1089_s7 = scalar_lea.vmem %s206_s12, 512  ;;  %p1097_p1 = scmp.lt.s32.totalorder %s206_s12, %s206_s12 }
  0x4e   : > { %p1090_p9 = scmp.ne.s32.totalorder %s206_s12, %s1089_s7  ;;  %p1098_p4 = scmp.lt.s32.totalorder %s1089_s7, %s1089_s7 }
  0x50   : > { %p1092_p12 = pnand %p1090_p9, %p1379_p13  ;;  %p1099_p8 = por %p1098_p4, %p1097_p1 }
  0x52   : > { %p1093_p0 = pneg %p1092_p12 }
  0x54   : > { %p1100_p2 = pnand %p1099_p8, %p1093_p0 }
  0x56   : > { %1103 = shalt.err (!%p1100_p2)
}
  0x57   : > { %933 = dma.hbm_to_vmem [thread:$0]  (!%p1363_p11), %s1648_s2, 512, %s206_s12, [#allocation6], %s1257_s11, %s1257_s11, %s1258_s13  }
  0x58   : > { %s1259_s29 = smov [#allocation10]   ;;  %s1104_s17 = scalar_lea.hbm %s1650_s4, 896 }
  0x59   : > { %s231_s14 = sshll.u32 %s1259_s29, 4  ;;  %p1105_p2 = scmp.ne.s32.totalorder %s1650_s4, %s1104_s17  ;;  %s232_s14 = int_to_ptr.vmem [resolvable:$true] %s231_s14 }
  0x5a   : > { %p1111_p10 = scmp.lt.u32.totalorder %s1104_s17, %s1650_s4 }
  0x5b   : > { %p1107_p8 = pnand %p1105_p2, %p1379_p13 }
  0x5d   : > { %p1108_p6 = pneg %p1107_p8 }
  0x5f   : > { %p1113_p3 = pnand %p1111_p10, %p1108_p6 }
  0x61   : > { %1116 = shalt.err (!%p1113_p3)
}
  0x62   : > { %s1117_s12 = scalar_lea.vmem %s232_s14, 896  ;;  %p1125_p12 = scmp.lt.s32.totalorder %s232_s14, %s232_s14 }
  0x63   : > { %p1118_p5 = scmp.ne.s32.totalorder %s232_s14, %s1117_s12  ;;  %p1126_p0 = scmp.lt.s32.totalorder %s1117_s12, %s1117_s12 }
  0x65   : > { %p1120_p7 = pnand %p1118_p5, %p1379_p13  ;;  %p1127_p1 = por %p1126_p0, %p1125_p12 }
  0x67   : > { %p1121_p9 = pneg %p1120_p7 }
  0x69   : > { %p1128_p4 = pnand %p1127_p1, %p1121_p9 }
  0x6b   : > { %1131 = shalt.err (!%p1128_p4)
}
  0x6c   : > { %939 = dma.hbm_to_vmem [thread:$0]  (!%p1363_p11), %s1650_s4, 896, %s232_s14, [#allocation9], %s1257_s11, %s1257_s11, %s1258_s13  }
  0x6d   : > { %s35_s24 = sadd.s32 1, %s1248_s22  ;;  %s44_s8 = sadd.s32 1, %s1240_s20 }
  0x6e   : > { %p37_p13 = scmp.ge.s32.totalorder %s35_s24, 2  ;;  %p51_p2 = scmp.ne.s32.totalorder %s1240_s20, %s1236_s19 }
  0x6f   : > { %p52_p8 = scmp.eq.s32.totalorder %s1252_s23, 0  ;;  %p952_p6 = scmp.lt.s32.totalorder %s1252_s23, 2 }
  0x70   : > { %s1683_s24 = smov (%p37_p13, %s35_s24), 0  ;;  %p1667_p3 = scmp.ne.s32.totalorder %s1660_s27, 0 }
  0x71   : > { %p53_p10 = por %p52_p8, %p51_p2  ;;  %s39_s15 = ssub.s32 %s1248_s22, %s1683_s24 }
  0x72   : > { %p1482_p5 = por %p1667_p3, %p51_p2  ;;  %s245_s16 = sand.u32 1, %s1240_s20  }
  0x73   : > { %p42_p7 = scmp.eq.s32.totalorder %s39_s15, 0  ;;  %s781_s14 = sshll.u32 %s245_s16, 6 }
  0x74   : > { %s804_s17 = sshll.u32 %s1248_s22, 10  ;;  %s249_s27 = scalar_lea.vmem [#allocation2], %s781_s14 }
  0x75   : > { %s1491_s25 = scalar_select %p42_p7, %s1240_s20, %s44_s8  }
  0x76   : > { %s1496_s7 = scalar_lea.hbm %s1646_s0, %s804_s17  ;;  %s257_s12 = sshll.u32 %s249_s27, 4  ;;  %s1504_s12 = int_to_ptr.vmem [resolvable:$true] %s257_s12 }
  0x77   : > { %p1500_p11 = pnand %p952_p6, %p53_p10  ;;  %s1506_s18 = scalar_lea.sflag [#allocation3], %s245_s16 }
  0x78   : > { %s1132_s8 = scalar_lea.hbm %s1496_s7, 1024  ;;  %s1137_s17 = scalar_lea.hbm %s1646_s0, 2048 }
  0x79   : > { %p1133_p9 = scmp.ne.s32.totalorder %s1496_s7, %s1132_s8  ;;  %p1134_p12 = pneg %p1500_p11 }
  0x7a   : > { %p1138_p4 = scmp.lt.u32.totalorder %s1496_s7, %s1646_s0  ;;  %p1139_p13 = scmp.lt.u32.totalorder %s1137_s17, %s1132_s8 }
  0x7b   : > { %p1135_p0 = pnand %p1134_p12, %p1133_p9  ;;  %p1141_p8 = scmp.lt.u32.totalorder %s1132_s8, %s1496_s7 }
  0x7c   : > { %p1140_p2 = por %p1139_p13, %p1138_p4 }
  0x7d   : > { %p1136_p1 = pneg %p1135_p0 }
  0x7e   : > { %p1142_p6 = por %p1141_p8, %p1140_p2 }
  0x80   : > { %p1143_p10 = pnand %p1142_p6, %p1136_p1 }
  0x82   : > { %1146 = shalt.err (!%p1143_p10)
}
  0x83   : > { %s1147_s16 = scalar_lea.vmem %s1504_s12, 1024  ;;  %s1260_s27 = smov [#allocation2]  }
  0x84   : > { %p1148_p3 = scmp.ne.s32.totalorder %s1504_s12, %s1147_s16  ;;  %s1152_s15 = sshll.u32 %s1260_s27, 4  ;;  %s1153_s15 = int_to_ptr.vmem [resolvable:$false] %s1152_s15 }
  0x85   : > { %s1154_s14 = scalar_lea.vmem %s1153_s15, 2048  ;;  %p1155_p0 = scmp.lt.s32.totalorder %s1504_s12, %s1153_s15 }
  0x86   : > { %p1150_p7 = pnand %p1148_p3, %p1134_p12  ;;  %p1156_p4 = scmp.lt.s32.totalorder %s1154_s14, %s1147_s16 }
  0x88   : > { %p1151_p9 = pneg %p1150_p7  ;;  %p1157_p13 = por %p1156_p4, %p1155_p0 }
  0x8a   : > { %p1158_p2 = pnand %p1157_p13, %p1151_p9 }
  0x8c   : > { %1161 = shalt.err (!%p1158_p2)
}
  0x8d   : > { %943 = dma.hbm_to_vmem [thread:$0]  (!%p1500_p11), %s1496_s7, 1024, %s1504_s12, %s1506_s18, %s1257_s11, %s1257_s11, %s1258_s13  }
  0x8e   : > { %p1670_p12 = scmp.ne.s32.totalorder %s1664_s30, 0 }
  0x8f   : > { %s1540_s8 = sand.u32 (!%p1670_p12), 1, %s1236_s19   ;;  %p1671_p1 = scmp.ne.s32.totalorder (!%p1670_p12), %s1661_s28, 0 }
  0x90   : > { %269 = sbr.rel (%p1670_p12) target bundleno = 651 (0x28b), region = 40  ;;  %s785_s17 = sshll.u32 (!%p1670_p12), %s1540_s8, 6 }
  0x91   : > { %s272_s6 = scalar_lea.sflag (!%p1670_p12), [#allocation3], %s1540_s8  ;;  %s275_s9 = scalar_lea.vmem (!%p1670_p12), [#allocation2], %s785_s17 }
  0x97   : > { %1215 = dma.done.wait (%p1671_p1), %s272_s6, 1024  }
  0x98   : > { %1217 = vsyncadd (%p1671_p1), %s272_s6, 4294966272  ;;  %p1672_p8 = scmp.ne.s32.totalorder %s1659_s26, 0 }
  0x9a   : > { %1219 = dma.done.wait (%p1672_p8), [#allocation6], 1024  }
  0x9b   : > { %1221 = vsyncadd (%p1672_p8), [#allocation6], 4294966272 }
  0x9c   : > { %1223 = dma.done.wait (%p1672_p8), [#allocation9], 1792  }
  0x9d   : > { %1225 = vsyncadd (%p1672_p8), [#allocation9], 4294965504  ;;  %v1261_v0 = vmov 0   ;;  %v318_v1 = vld [vmem:[%s275_s9] sm:$0xff]  ;;  %v319_v2 = vld [vmem:[%s275_s9 + $0x8] sm:$0xff]  ;;  %vm354_vm0 = vcmask 523264  }
  0x9e   : > { %1018 = vset.pattern.permute.xlu0 %v1261_v0  ;;  %1019 = vset.pattern.permute.xlu1 %v1261_v0  ;;  %v320_v3 = vld [vmem:[%s275_s9 + $0x10] sm:$0xff]  ;;  %v879_v4 = vpack.c.bf16 %v319_v2, %v318_v1  ;;  %v321_v5 = vld [vmem:[%s275_s9 + $0x18] sm:$0xff]  ;;  %v322_v7 = vld [vmem:[%s275_s9 + $0x20] sm:$0xff]  ;;  %v1262_v28 = vmov 0.0|0.0   ;;  %vm1263_vm1 = vmmov 0   ;;  %v1264_v29 = vmov 0.0  }
  0x9f   : > { %v883_v6 = vpack.c.bf16 %v321_v5, %v320_v3  ;;  %v323_v8 = vld [vmem:[%s275_s9 + $0x28] sm:$0xff]  ;;  %v326_v9 = vld [vmem:[#allocation5] sm:$0xff]  ;;  %v332_v11 = vld [vmem:[#allocation7 + $0x10] sm:$0xff]  ;;  %901 = vmatprep.subr.bf16.mxu1 %v1262_v28  ;;  %861 = vmatprep.mubr.msk.f32.mxu1 %vm1263_vm1, %v1264_v29  ;;  %vm505_vm2 = vcmask 261120   ;;  %s905_s26 = smul.u32 56, %s1540_s8  ;;  %vm633_vm3 = vcmask 256000  }
  0xa0   : > { %880 = vmatprep.subr.bf16.mxu0 %v879_v4  ;;  %844 = vmatprep.mubr.msk.f32.mxu0 %vm354_vm0, %v326_v9  ;;  %v330_v10 = vld [vmem:[#allocation7] sm:$0xff]  ;;  %v887_v12 = vpack.c.bf16 %v323_v8, %v322_v7  ;;  %v324_v13 = vld [vmem:[%s275_s9 + $0x30] sm:$0xff]  ;;  %v325_v14 = vld [vmem:[%s275_s9 + $0x38] sm:$0xff]  ;;  %s906_s11 = smul.u32 896, %s1244_s21  ;;  %s636_s21 = scalar_lea.sflag [#allocation4], %s1540_s8 }
  0xa1   : > { %882 = vmatpush3.bf16.msra.mxu0 %v879_v4  ;;  %336 = vperm.xlu0 %1018, %v330_v10   ;;  %v331_v15 = vld [vmem:[#allocation7 + $0x8] sm:$0xff]  ;;  %v333_v16 = vld [vmem:[#allocation7 + $0x18] sm:$0xff]  ;;  %v891_v17 = vpack.c.bf16 %v325_v14, %v324_v13  ;;  %v464_v19 = vld [vmem:[#allocation10 + $0x8] sm:$0xff]  ;;  %s1575_s28 = scalar_lea.vmem [#allocation11], %s905_s26  ;;  %s1265_s18 = smov [#allocation11]  }
  0xa2   : > { %884 = vmatprep.subr.bf16.mxu0 %v883_v6  ;;  %346 = vperm.xlu1 %1019, %v332_v11   ;;  %v463_v18 = vld [vmem:[#allocation10] sm:$0xff]  ;;  %v465_v20 = vld [vmem:[#allocation10 + $0x10] sm:$0xff]  ;;  %v466_v21 = vld [vmem:[#allocation10 + $0x18] sm:$0xff]  ;;  %s650_s30 = sshll.u32 %s1575_s28, 4  ;;  %s1596_s12 = scalar_lea.hbm %s1651_s5, %s906_s11  ;;  %s1589_s30 = int_to_ptr.vmem [resolvable:$true] %s650_s30 }
  0xa3   : > { %v327_v22 = vld [vmem:[#allocation5 + $0x8] sm:$0xff]  ;;  %v328_v23 = vld [vmem:[#allocation5 + $0x10] sm:$0xff]  ;;  %v467_v24 = vld [vmem:[#allocation10 + $0x20] sm:$0xff]  ;;  %s1162_s10 = scalar_lea.vmem %s1589_s30, 896  ;;  %s1166_s16 = sshll.u32 %s1265_s18, 4  ;;  %s1167_s16 = int_to_ptr.vmem [resolvable:$false] %s1166_s16 }
  0xa4   : > { %v468_v25 = vld [vmem:[#allocation10 + $0x28] sm:$0xff]  ;;  %v329_v26 = vld [vmem:[#allocation5 + $0x18] sm:$0xff]  ;;  %v469_v27 = vld [vmem:[#allocation10 + $0x30] sm:$0x7]  ;;  %p1163_p11 = scmp.ne.s32.totalorder %s1589_s30, %s1162_s10  ;;  %s1168_s27 = scalar_lea.vmem %s1167_s16, 1792 }
  0xa5   : > { %886 = vmatpush3.bf16.msra.mxu0 %v883_v6  ;;  %341 = vperm.xlu0 %1018, %v331_v15   ;;  %v456_v48 = vld [vmem:[#allocation8] sm:$0xff]  ;;  %v457_v49 = vld [vmem:[#allocation8 + $0x8] sm:$0xff]  ;;  %v458_v50 = vld [vmem:[#allocation8 + $0x10] sm:$0xff]  ;;  %p1169_p3 = scmp.lt.s32.totalorder %s1589_s30, %s1167_s16  ;;  %p1170_p7 = scmp.lt.s32.totalorder %s1168_s27, %s1162_s10 }
  0xa6   : > { %888 = vmatprep.subr.bf16.mxu0 %v887_v12  ;;  %351 = vperm.xlu1 %1019, %v333_v16   ;;  %v459_v51 = vld [vmem:[#allocation8 + $0x18] sm:$0xff]  ;;  %v460_v52 = vld [vmem:[#allocation8 + $0x20] sm:$0xff]  ;;  %v461_v53 = vld [vmem:[#allocation8 + $0x28] sm:$0xff]  ;;  %p1164_p6 = pnand %p1163_p11, %p1482_p5 }
  0xa7   : > { %v462_v54 = vld [vmem:[#allocation8 + $0x30] sm:$0x7]  ;;  %p1171_p9 = por %p1170_p7, %p1169_p3 }
  0xa8   : > { %p1165_p10 = pneg %p1164_p6 }
  0xa9   : > { %890 = vmatpush3.bf16.msra.mxu0 %v887_v12  ;;  %472 = vperm.xlu0 %1018, %v463_v18  }
  0xaa   : > { %892 = vmatprep.subr.bf16.mxu0 %v891_v17  ;;  %477 = vperm.xlu1 %1019, %v464_v19   ;;  %p1172_p0 = pnand %p1171_p9, %p1165_p10 }
  0xad   : > { %894 = vmatpush3.bf16.msra.mxu0 %v891_v17  ;;  %482 = vperm.xlu0 %1018, %v465_v20  }
  0xae   : > { %487 = vperm.xlu1 %1019, %v466_v21   ;;  %895 = vmatprep.subr.bf16.mxu0 %v1262_v28 }
  0xb0   : > { %845 = vmatmul.mubr.msk.f32.vlgmr.msra.gmra.mrb[0].mxu0 %vm354_vm0, %v327_v22 }
  0xb1   : > { %847 = vmatprep.mubr.msk.f32.mxu0 %vm354_vm0, %v328_v23  ;;  %492 = vperm.xlu0 %1018, %v467_v24  }
  0xb2   : > { %497 = vperm.xlu1 %1019, %v468_v25  }
  0xb4   : > { %848 = vmatmul.mubr.msk.f32.gmra.mrb[2].mxu0 %vm354_vm0, %v329_v26 }
  0xb5   : > { %502 = vperm.xlu0 %1018, %v469_v27   ;;  %858 = vmatprep.mubr.msk.f32.mxu0 %vm1263_vm1, %v1264_v29 }
 0x120   : > { %v337_v30 = vpop.permute.xlu0 %336 }
 0x121   : > { %v347_v31 = vpop.permute.xlu1 %346 }
 0x124   : > { %v342_v32 = vpop.permute.xlu0 %341 }
 0x125   : > { %v352_v38 = vpop.permute.xlu1 %351 }
 0x128   : > { %v473_v55 = vpop.permute.xlu0 %472 }
 0x129   : > { %v478_v56 = vpop.permute.xlu1 %477 }
 0x12c   : > { %v483_v63 = vpop.permute.xlu0 %482 }
 0x12d   : > { %v488_v3 = vpop.permute.xlu1 %487 }
 0x130   : > { %v493_v7 = vpop.permute.xlu0 %492 }
 0x131   : > { %v498_v11 = vpop.permute.xlu1 %497 }
 0x134   : > { %v503_v15 = vpop.permute.xlu0 %502 }
 0x183   : > { %v846_v33 = vpop.f32.mrb[0].mxu0 }
 0x184   : > { %v439_v34 = vadd.f32 %v846_v33, %v342_v32  ;;  %v433_v35 = vpop.f32.mrb[1].mxu0 }
 0x185   : > { %v434_v36 = vadd.f32 %v433_v35, %v337_v30 }
 0x186   : > { %v453_v37 = vmax.f32 %v439_v34, 0.0 }
 0x187   : > { %v452_v39 = vmax.f32 %v434_v36, 0.0  ;;  %v849_v40 = vpop.f32.mrb[2].mxu0 }
 0x188   : > { %v449_v41 = vadd.f32 %v849_v40, %v352_v38  ;;  %v443_v42 = vpop.f32.mrb[3].mxu0 }
 0x189   : > { %v896_v43 = vpack.c.bf16 %v453_v37, %v452_v39  ;;  %v444_v44 = vadd.f32 %v443_v42, %v347_v31 }
 0x18a   : > { %v455_v45 = vmax.f32 %v449_v41, 0.0 }
 0x18b   : > { %v454_v46 = vmax.f32 %v444_v44, 0.0  ;;  %897 = vmatpush3.bf16.msra.mxu0 %v896_v43  ;;  %903 = vmatpush3.bf16.msra.mxu1 %v896_v43 }
 0x18c   : > { %898 = vmatprep.subr.bf16.mxu0 %v1262_v28  ;;  %902 = vmatprep.subr.bf16.mxu1 %v1262_v28 }
 0x18d   : > { %v899_v47 = vpack.c.bf16 %v455_v45, %v454_v46 }
 0x18f   : > { %900 = vmatpush3.bf16.msra.mxu0 %v899_v47  ;;  %904 = vmatpush3.bf16.msra.mxu1 %v899_v47 }
 0x192   : > { %859 = vmatmul.mubr.msk.f32.vlgmr.msra.gmra.mrb[4].mxu0 %vm505_vm2, %v456_v48  ;;  %862 = vmatmul.mubr.msk.f32.vlgmr.msra.gmra.mrb[0].mxu1 %vm505_vm2, %v457_v49 }
 0x193   : > { %864 = vmatprep.mubr.msk.f32.mxu1 %vm1263_vm1, %v1264_v29 }
 0x196   : > { %865 = vmatmul.mubr.msk.f32.gmra.mrb[2].mxu1 %vm505_vm2, %v458_v50 }
 0x197   : > { %867 = vmatprep.mubr.msk.f32.mxu1 %vm1263_vm1, %v1264_v29 }
 0x19a   : > { %868 = vmatmul.mubr.msk.f32.gmra.mrb[4].mxu1 %vm505_vm2, %v459_v51 }
 0x19b   : > { %870 = vmatprep.mubr.msk.f32.mxu1 %vm1263_vm1, %v1264_v29 }
 0x19e   : > { %871 = vmatmul.mubr.msk.f32.gmra.mrb[6].mxu1 %vm505_vm2, %v460_v52 }
 0x19f   : > { %873 = vmatprep.mubr.msk.f32.mxu1 %vm1263_vm1, %v1264_v29 }
 0x1a2   : > { %874 = vmatmul.mubr.msk.f32.gmra.mrb[8].mxu1 %vm505_vm2, %v461_v53 }
 0x1a3   : > { %876 = vmatprep.mubr.msk.f32.mxu1 %vm1263_vm1, %v1264_v29 }
 0x1a6   : > { %877 = vmatmul.mubr.msk.f32.gmra.mrb[10].mxu1 %vm505_vm2, %v462_v54 }
 0x265   : > { %v593_v57 = vpop.f32.mrb[4].mxu0  ;;  %v598_v58 = vpop.f32.mrb[0].mxu1 }
 0x266   : > { %v594_v59 = vadd.f32 %v593_v57, %v473_v55  ;;  %v599_v60 = vadd.f32 %v598_v58, %v478_v56  ;;  %v863_v61 = vpop.f32.mrb[1].mxu1  ;;  %v860_v62 = vpop.f32.mrb[5].mxu0 }
 0x268   : > { %627 = vst.msk [vmem:[%s1575_s28] sm:$0xff] %vm505_vm2, %v594_v59  ;;  %628 = vst.msk [vmem:[%s1575_s28 + $0x8] sm:$0xff] %vm505_vm2, %v599_v60 }
 0x269   : > { %v603_v0 = vpop.f32.mrb[2].mxu1 }
 0x26a   : > { %v604_v1 = vadd.f32 %v603_v0, %v483_v63  ;;  %v866_v2 = vpop.f32.mrb[3].mxu1 }
 0x26c   : > { %629 = vst.msk [vmem:[%s1575_s28 + $0x10] sm:$0xff] %vm505_vm2, %v604_v1 }
 0x26d   : > { %v608_v4 = vpop.f32.mrb[4].mxu1 }
 0x26e   : > { %v609_v5 = vadd.f32 %v608_v4, %v488_v3  ;;  %v869_v6 = vpop.f32.mrb[5].mxu1 }
 0x270   : > { %630 = vst.msk [vmem:[%s1575_s28 + $0x18] sm:$0xff] %vm505_vm2, %v609_v5 }
 0x271   : > { %v613_v8 = vpop.f32.mrb[6].mxu1 }
 0x272   : > { %v614_v9 = vadd.f32 %v613_v8, %v493_v7  ;;  %v872_v10 = vpop.f32.mrb[7].mxu1 }
 0x274   : > { %631 = vst.msk [vmem:[%s1575_s28 + $0x20] sm:$0xff] %vm505_vm2, %v614_v9 }
 0x275   : > { %v618_v12 = vpop.f32.mrb[8].mxu1 }
 0x276   : > { %v619_v13 = vadd.f32 %v618_v12, %v498_v11  ;;  %v875_v14 = vpop.f32.mrb[9].mxu1 }
 0x278   : > { %632 = vst.msk [vmem:[%s1575_s28 + $0x28] sm:$0xff] %vm505_vm2, %v619_v13 }
 0x279   : > { %v623_v16 = vpop.f32.mrb[10].mxu1 }
 0x27a   : > { %v624_v17 = vadd.f32 %v623_v16, %v503_v15  ;;  %v878_v18 = vpop.f32.mrb[11].mxu1 }
 0x27c   : > { %634 = vst.msk [vmem:[%s1575_s28 + $0x30] sm:$0x7] %vm633_vm3, %v624_v17 }
 0x27d   : > { %1175 = shalt.err (!%p1172_p0)
}
 0x27e   : > { %s1176_s15 = scalar_lea.hbm %s1596_s12, 896  ;;  %s1180_s6 = scalar_lea.hbm %s1651_s5, 1792 }
 0x27f   : > { %p1177_p4 = scmp.ne.s32.totalorder %s1596_s12, %s1176_s15  ;;  %p1181_p12 = scmp.lt.u32.totalorder %s1596_s12, %s1651_s5 }
 0x280   : > { %p1182_p1 = scmp.lt.u32.totalorder %s1180_s6, %s1176_s15  ;;  %p1184_p11 = scmp.lt.u32.totalorder %s1176_s15, %s1596_s12 }
 0x281   : > { %p1178_p13 = pnand %p1177_p4, %p1482_p5 }
 0x282   : > { %p1183_p8 = por %p1182_p1, %p1181_p12 }
 0x283   : > { %p1179_p2 = pneg %p1178_p13 }
 0x284   : > { %p1185_p6 = por %p1184_p11, %p1183_p8 }
 0x286   : > { %p1186_p10 = pnand %p1185_p6, %p1179_p2 }
 0x288   : > { %1189 = shalt.err (!%p1186_p10)
}
 0x289   : > { %s1266_s28 = smov 128   ;;  %s1267_s11 = smov 8  }
 0x28a   : > { %925 = dma.vmem_to_hbm [thread:$0]  (%p1482_p5), %s1589_s30, 896, %s1596_s12, %s636_s21, %s1266_s28, %s1266_s28, %s1267_s11  }
 0x28b PF: > { %s1673_s13 = sld [smem:[#allocation16_spill]]  ;;  %s1674_s7 = sld [smem:[#allocation17_spill]] }
 0x28c   : > { %p1676_p7 = scmp.ge.s32.totalorder %s1252_s23, 2 }
 0x291   : > { %s665_s10 = sand.u32 1, %s1673_s13   ;;  %p1675_p3 = scmp.ne.s32.totalorder %s1674_s7, 0 }
 0x292   : > { %s666_s18 = scalar_lea.sflag [#allocation4], %s665_s10 }
 0x293   : > { %p945_p9 = pnand %p1676_p7, %p1675_p3 }
 0x295   : > { %1227 = dma.done.wait (!%p945_p9), %s666_s18, 896  }
 0x296   : > { %1229 = vsyncadd (!%p945_p9), %s666_s18, 4294966400  ;;  %s23_s23 = sadd.s32 1, %s1252_s23   ;;  %s1677_s18 = smov %s1236_s19 }
 0x297   : > { %p20_p0 = scmp.ge.s32.totalorder %s23_s23, 4   ;;  %s1678_s19 = smov %s1240_s20 }
 0x298   : > { %s1679_s20 = smov %s1491_s25  ;;  %s1680_s21 = smov %s1248_s22 }
 0x299   : > { %s1681_s22 = smov %s1683_s24  ;;  %22 = sbr.rel (!%p20_p0) target bundleno = 8 (0x8), region = 101 }
 0x2a0   :  { %671 = vsyncpa [#allocation3], 1 }
 0x2a1   :  { %673 = vsyncpa [#allocation3 + $0x1], 1 }
 0x2a2   :  { %674 = vsyncpa [#allocation6], 1 }
 0x2a3   :  { %675 = vsyncpa [#allocation9], 1 }
 0x2a4   :  { %676 = vsyncpa [#allocation4], 1 }
 0x2a5   :  { %678 = vsyncpa [#allocation4 + $0x1], 1 }

</bundles_post_ra>
